<compile_context>
chip_gen: v6e
topology: v6e:2x2x1
jax: 0.10.0
libtpu: 0.0.40
codegen_flags: <defaults>
</compile_context>

<pallas_src>
import functools

import jax
import jax.numpy as jnp
from jax.experimental import pallas as pl
from jax.experimental.pallas import tpu as pltpu

N_ACTIONS = 3
N_STATES = 4
HIDDEN = 10

_LANE = 128
_SAMPLES_PER_ROW = _LANE // N_STATES              # 32 samples x 4 features = 128 lanes
_HID_PER_SAMPLE = 16                              # hidden 10 padded to 16 per sample
_HID_LANES = _SAMPLES_PER_ROW * _HID_PER_SAMPLE   # 512
_OUT_LANES = _SAMPLES_PER_ROW * N_ACTIONS         # 96
_ROW_GRANULE = 16                                 # rows per tile granule (bf16-safe sublanes)
_SAMPLE_GRANULE = _ROW_GRANULE * _SAMPLES_PER_ROW  # 512 samples

# Feature-major slab layout: rows 0:16 -> [W1 | b1], rows 16:19 -> [W2 | b2].
_SLAB_ROWS = 24
_SLAB_LANES = 128
_HIDDEN_PAD = 16

_DEFAULT_BLOCK_SAMPLES = 65536    # samples per grid step; 131072 / 262144 also fine


def _cdiv(a, b):
    return -(-a // b)


def _balanced_tiling(n, granule, max_block, *, min_split_granules=None):
    """Split `n` units into an even number of equal tiles.

    Each tile is a whole number of `granule` units and at most ~`max_block`
    units, so per-tile padding is bounded by < granule and multi-tile grids are
    evenly split across the two v7x TensorCores.
    Returns (n_tiles, tile_units, total_units).
    """
    n_g = max(1, _cdiv(n, granule))
    max_g = max(1, max_block // granule)
    n_tiles = _cdiv(n_g, max_g)
    if n_tiles == 1 and min_split_granules is not None and n_g >= 2 * min_split_granules:
        n_tiles = 2                    # keep both TCs busy for mid-size batches
    if n_tiles > 1 and n_tiles % 2:
        n_tiles += 1                   # even tile count -> balanced megacore split
    tile_g = _cdiv(n_g, n_tiles)
    tile = tile_g * granule
    return n_tiles, tile, n_tiles * tile


# ----------------------------------------------------------------------------
# Kernels
# ----------------------------------------------------------------------------
def _packed_kernel(w1_ref, b1_ref, w2_ref, b2_ref, x_ref, o_ref, *, compute_dtype):
    """Batch-major packed layout, one batch tile.

    x_ref: (tile_rows, 128) -- 32 samples per row, 4 features each (lane-dense).
    o_ref: (tile_rows, 96)  -- 32 samples per row, 3 Q-values each.
    w1_ref/w2_ref hold block-diagonal expansions of W1^T / W2^T, so the whole
    per-sample MLP is two plain MXU matmuls with no relayout of x.
    """
    x = x_ref[...].astype(compute_dtype)
    w1 = w1_ref[...].astype(compute_dtype)
    w2 = w2_ref[...].astype(compute_dtype)
    h = jnp.dot(x, w1, preferred_element_type=jnp.float32)            # (tr, 512)
    h = jnp.maximum(h + b1_ref[...], 0.0)                             # padded lanes: relu(0)=0
    y = jnp.dot(h.astype(compute_dtype), w2,
                preferred_element_type=jnp.float32) + b2_ref[...]     # (tr, 96)
    o_ref[...] = y.astype(o_ref.dtype)


def _feature_major_kernel(slab_ref, xt_ref, ot_ref, *, compute_dtype):
    """Feature-major layout, one batch tile: o^T = W2 @ relu(W1 @ x^T + b1) + b2."""
    w1 = slab_ref[0:_HIDDEN_PAD, 0:N_STATES].astype(compute_dtype)               # (16, 4)
    b1 = slab_ref[0:_HIDDEN_PAD, N_STATES:N_STATES + 1]                          # (16, 1)
    w2 = slab_ref[_HIDDEN_PAD:_HIDDEN_PAD + N_ACTIONS,
                  0:_HIDDEN_PAD].astype(compute_dtype)                           # (3, 16)
    b2 = slab_ref[_HIDDEN_PAD:_HIDDEN_PAD + N_ACTIONS,
                  _HIDDEN_PAD:_HIDDEN_PAD + 1]                                   # (3, 1)
    xt = xt_ref[...].astype(compute_dtype)                                       # (4, tb)
    h = jnp.dot(w1, xt, preferred_element_type=jnp.float32)                      # (16, tb)
    h = jnp.maximum(h + b1, 0.0)
    y = jnp.dot(w2, h.astype(compute_dtype), preferred_element_type=jnp.float32) + b2
    ot_ref[...] = y.astype(ot_ref.dtype)


# ----------------------------------------------------------------------------
# Parameter packing (done once per parameter update; all tensors are tiny)
# ----------------------------------------------------------------------------
def pack_params(w1, b1, w2, b2):
    """Pack torch-layout params (w1:(10,4), b1:(10,), w2:(3,10), b2:(3,)).

    Returns both kernel layouts:
      * block-diagonal expansions for the packed batch-major path
      * a (24,128) slab for the feature-major path
    All stay VMEM-resident (constant block index -> fetched once per call).
    """
    w1 = jnp.asarray(w1, jnp.float32)
    b1 = jnp.asarray(b1, jnp.float32)
    w2 = jnp.asarray(w2, jnp.float32)
    b2 = jnp.asarray(b2, jnp.float32)

    # --- packed (batch-major) layout ---------------------------------------
    w1t = jnp.zeros((N_STATES, _HID_PER_SAMPLE), jnp.float32).at[:, :HIDDEN].set(w1.T)
    b1p = jnp.zeros((_HID_PER_SAMPLE,), jnp.float32).at[:HIDDEN].set(b1)
    w2p = jnp.zeros((_HID_PER_SAMPLE, N_ACTIONS), jnp.float32).at[:HIDDEN, :].set(w2.T)
    eye = jnp.eye(_SAMPLES_PER_ROW, dtype=jnp.float32)
    # w1big[4j+f, 16j+k] = W1^T[f,k]   (block-diagonal over the 32 samples/row)
    w1big = jnp.einsum("ij,fk->ifjk", eye, w1t).reshape(_LANE, _HID_LANES)
    # w2big[16j+k, 3j+c] = W2^T[k,c]
    w2big = jnp.einsum("ij,kc->ikjc", eye, w2p).reshape(_HID_LANES, _OUT_LANES)
    b1big = jnp.tile(b1p, _SAMPLES_PER_ROW).reshape(1, _HID_LANES)
    b2big = jnp.tile(b2, _SAMPLES_PER_ROW).reshape(1, _OUT_LANES)

    # --- feature-major slab --------------------------------------------------
    slab = jnp.zeros((_SLAB_ROWS, _SLAB_LANES), jnp.float32)
    slab = slab.at[0:HIDDEN, 0:N_STATES].set(w1)
    slab = slab.at[0:HIDDEN, N_STATES].set(b1)
    slab = slab.at[_HIDDEN_PAD:_HIDDEN_PAD + N_ACTIONS, 0:HIDDEN].set(w2)
    slab = slab.at[_HIDDEN_PAD:_HIDDEN_PAD + N_ACTIONS, _HIDDEN_PAD].set(b2)

    return {"w1big": w1big, "b1big": b1big, "w2big": w2big, "b2big": b2big,
            "slab": slab}


# ----------------------------------------------------------------------------
# Forward wrappers
# ----------------------------------------------------------------------------
def dqn_net_forward(x, params, *, x_dtype=None, out_dtype=jnp.float32,
                    compute_dtype=jnp.float32,
                    block_samples=_DEFAULT_BLOCK_SAMPLES):
    """x: (B, N_STATES) -> (B, N_ACTIONS), matching the torch `net` forward.

    No wrapper-side transpose: x is viewed as (B/32, 128) (32 samples per
    128-lane row) and the kernel uses block-diagonal weight expansions, so the
    only B-scaled HBM traffic is one read of x and one write of the Q-values.

    x_dtype / out_dtype: jnp.bfloat16 halves the streamed bytes (best when the
                         caller already stores/produces x in bf16).
    compute_dtype:       jnp.bfloat16 runs the matmuls in one MXU pass with f32
                         accumulation; default f32 matches the reference exactly.
    block_samples:       samples per grid step (65536 default; 131072/262144 ok).
    """
    B = x.shape[0]
    assert x.shape[1] == N_STATES
    if x_dtype is not None and x.dtype != x_dtype:
        x = x.astype(x_dtype)

    n_tiles, tile_samples, total_samples = _balanced_tiling(
        B, _SAMPLE_GRANULE, block_samples, min_split_granules=4)
    tile_rows = tile_samples // _SAMPLES_PER_ROW
    total_rows = total_samples // _SAMPLES_PER_ROW
    if total_samples != B:
        x = jnp.pad(x, ((0, total_samples - B), (0, 0)))
    xr = x.reshape(total_rows, _LANE)        # contiguous view: 32 samples per row

    isz_x = jnp.dtype(x.dtype).itemsize
    isz_o = jnp.dtype(out_dtype).itemsize
    param_bytes = 4 * (_LANE * _HID_LANES + _HID_LANES
                       + _HID_LANES * _OUT_LANES + _OUT_LANES)
    x_tile_b = tile_rows * _LANE * isz_x
    o_tile_b = tile_rows * _OUT_LANES * isz_o
    tmp_b = tile_rows * (_HID_LANES + _OUT_LANES) * 4
    vmem_limit = int(min(64 << 20,
                         max(32 << 20,
                             2 * (x_tile_b + o_tile_b) + 2 * tmp_b
                             + param_bytes + (4 << 20))))
    cost = pl.CostEstimate(
        flops=2 * B * (N_STATES * HIDDEN + HIDDEN * N_ACTIONS),
        transcendentals=0,
        bytes_accessed=int(total_rows * _LANE * isz_x
                           + total_rows * _OUT_LANES * isz_o + param_bytes))

    out = pl.pallas_call(
        functools.partial(_packed_kernel, compute_dtype=compute_dtype),
        out_shape=jax.ShapeDtypeStruct((total_rows, _OUT_LANES), out_dtype),
        grid=(n_tiles,),
        in_specs=[
            # Constant block index -> params DMA'd once, resident for all steps.
            pl.BlockSpec((_LANE, _HID_LANES), lambda i: (0, 0)),
            pl.BlockSpec((1, _HID_LANES), lambda i: (0, 0)),
            pl.BlockSpec((_HID_LANES, _OUT_LANES), lambda i: (0, 0)),
            pl.BlockSpec((1, _OUT_LANES), lambda i: (0, 0)),
            pl.BlockSpec((tile_rows, _LANE), lambda i: (i, 0)),
        ],
        out_specs=pl.BlockSpec((tile_rows, _OUT_LANES), lambda i: (i, 0)),
        compiler_params=pltpu.CompilerParams(
            dimension_semantics=("parallel",),    # shard batch tiles across TCs
            vmem_limit_bytes=vmem_limit),
        cost_estimate=cost,
    )(params["w1big"], params["b1big"], params["w2big"], params["b2big"], xr)

    q = out.reshape(total_samples, N_ACTIONS)     # contiguous view back to (B_pad, 3)
    return q if total_samples == B else q[:B]


def dqn_net_forward_feature_major(xt, params, *, out_dtype=jnp.float32,
                                  compute_dtype=jnp.float32,
                                  block_samples=_DEFAULT_BLOCK_SAMPLES):
    """Feature-major path: xt is (N_STATES, B) (replay buffer stored feature-major);
    returns (N_ACTIONS, B) action-major Q-values.  Neither the input nor the
    output ever goes through a relayout pass."""
    assert xt.shape[0] == N_STATES
    B = xt.shape[1]
    n_tiles, tb, bp = _balanced_tiling(B, _LANE, block_samples, min_split_granules=16)
    if bp != B:
        xt = jnp.pad(xt, ((0, 0), (0, bp - B)))

    isz_x = jnp.dtype(xt.dtype).itemsize
    isz_o = jnp.dtype(out_dtype).itemsize
    slab_bytes = _SLAB_ROWS * _SLAB_LANES * 4
    x_tile_b = N_STATES * tb * isz_x
    o_tile_b = N_ACTIONS * tb * isz_o
    tmp_b = _HIDDEN_PAD * tb * 4
    vmem_limit = int(min(64 << 20,
                         max(32 << 20,
                             2 * (x_tile_b + o_tile_b) + 2 * tmp_b
                             + slab_bytes + (4 << 20))))
    cost = pl.CostEstimate(
        flops=2 * B * (N_STATES * HIDDEN + HIDDEN * N_ACTIONS),
        transcendentals=0,
        bytes_accessed=int(N_STATES * bp * isz_x + N_ACTIONS * bp * isz_o + slab_bytes))

    out = pl.pallas_call(
        functools.partial(_feature_major_kernel, compute_dtype=compute_dtype),
        out_shape=jax.ShapeDtypeStruct((N_ACTIONS, bp), out_dtype),
        grid=(n_tiles,),
        in_specs=[
            pl.BlockSpec((_SLAB_ROWS, _SLAB_LANES), lambda i: (0, 0)),
            pl.BlockSpec((N_STATES, tb), lambda i: (0, i)),
        ],
        out_specs=pl.BlockSpec((N_ACTIONS, tb), lambda i: (0, i)),
        compiler_params=pltpu.CompilerParams(
            dimension_semantics=("parallel",),
            vmem_limit_bytes=vmem_limit),
        cost_estimate=cost,
    )(params["slab"], xt)

    return out if bp == B else out[:, :B]


# ----------------------------------------------------------------------------
# Init / reference
# ----------------------------------------------------------------------------
def init_params(key):
    """Mirror the PyTorch module: weights ~ N(0, 0.1) (explicit normal_ in `net`),
    biases use nn.Linear's default U(-1/sqrt(fan_in), 1/sqrt(fan_in)).
    Stored in torch layout (out_features, in_features)."""
    k1, k2, k3, k4 = jax.random.split(key, 4)
    w1 = 0.1 * jax.random.normal(k1, (HIDDEN, N_STATES), dtype=jnp.float32)
    b1_bound = 1.0 / float(N_STATES) ** 0.5
    b1 = jax.random.uniform(k2, (HIDDEN,), jnp.float32, -b1_bound, b1_bound)
    w2 = 0.1 * jax.random.normal(k3, (N_ACTIONS, HIDDEN), dtype=jnp.float32)
    b2_bound = 1.0 / float(HIDDEN) ** 0.5
    b2 = jax.random.uniform(k4, (N_ACTIONS,), jnp.float32, -b2_bound, b2_bound)
    return w1, b1, w2, b2


def reference_forward(x, w1, b1, w2, b2):
    h = jnp.maximum(x @ w1.T + b1, 0.0)
    return h @ w2.T + b2


if __name__ == "__main__":
    key = jax.random.PRNGKey(0)
    k_params, k_x = jax.random.split(key)
    w1, b1, w2, b2 = init_params(k_params)
    params = pack_params(w1, b1, w2, b2)

    # 1) Small acting-time batch, default f32 path (batch-major, no wrapper relayout).
    B = 2
    x = jax.random.normal(k_x, (B, N_STATES), dtype=jnp.float32)
    out = jax.block_until_ready(dqn_net_forward(x, params))
    ref = reference_forward(x, w1, b1, w2, b2)
    assert out.shape == (B, N_ACTIONS)
    assert jnp.allclose(out, ref, atol=1e-5, rtol=1e-5)

    # 2) bf16-streamed x (kernel upcasts to f32) — matches reference on bf16-rounded x.
    out_b = jax.block_until_ready(dqn_net_forward(x, params, x_dtype=jnp.bfloat16))
    ref_b = reference_forward(x.astype(jnp.bfloat16).astype(jnp.float32), w1, b1, w2, b2)
    assert jnp.allclose(out_b, ref_b, atol=1e-5, rtol=1e-5)

    # 3) Larger, non-aligned batch exercising a multi-tile, even-count "parallel" grid.
    B2 = 1200
    x2 = jax.random.normal(k_x, (B2, N_STATES), dtype=jnp.float32)
    out2 = jax.block_until_ready(dqn_net_forward(x2, params, block_samples=512))
    ref2 = reference_forward(x2, w1, b1, w2, b2)
    assert out2.shape == (B2, N_ACTIONS)
    assert jnp.allclose(out2, ref2, atol=1e-5, rtol=1e-5)

    # 4) Full bf16 streaming + bf16 MXU compute (f32 accumulate) — loose tolerance.
    out3 = jax.block_until_ready(dqn_net_forward(
        x2, params, x_dtype=jnp.bfloat16, compute_dtype=jnp.bfloat16,
        out_dtype=jnp.bfloat16, block_samples=512))
    assert jnp.allclose(out3.astype(jnp.float32), ref2, atol=8e-2, rtol=8e-2)

    # 5) Feature-major path: caller stores states as (N_STATES, B); output stays (3, B).
    xt2 = jnp.transpose(x2)   # transpose here only to construct the test input
    out4 = jax.block_until_ready(dqn_net_forward_feature_major(xt2, params))
    assert out4.shape == (N_ACTIONS, B2)
    assert jnp.allclose(jnp.transpose(out4), ref2, atol=1e-5, rtol=1e-5)

    print("KERNEL_OK")
</pallas_src>

<mosaic_0001>
module attributes {stable_mosaic.version = 11 : i64} {
  func.func @_packed_kernel(%arg0: i32, %arg1: memref<128x512xf32, #tpu.memory_space<vmem>>, %arg2: memref<1x512xf32, #tpu.memory_space<vmem>>, %arg3: memref<512x96xf32, #tpu.memory_space<vmem>>, %arg4: memref<1x96xf32, #tpu.memory_space<vmem>>, %arg5: memref<16x128xf32, #tpu.memory_space<vmem>>, %arg6: memref<16x96xf32, #tpu.memory_space<vmem>>) attributes {dimension_semantics = [#tpu.dimension_semantics<parallel>], iteration_bounds = array<i64: 1>, scalar_prefetch = 0 : i64, scratch_operands = 0 : i64, tpu.core_type = #tpu.core_type<tc>, window_params = [{pipeline_mode = #tpu.pipeline_mode<synchronous>, transform_indices = @transform_0, window_bounds = array<i64: 128, 512>}, {pipeline_mode = #tpu.pipeline_mode<synchronous>, transform_indices = @transform_1, window_bounds = array<i64: 1, 512>}, {pipeline_mode = #tpu.pipeline_mode<synchronous>, transform_indices = @transform_2, window_bounds = array<i64: 512, 96>}, {pipeline_mode = #tpu.pipeline_mode<synchronous>, transform_indices = @transform_3, window_bounds = array<i64: 1, 96>}, {transform_indices = @transform_4, window_bounds = array<i64: 16, 128>}, {transform_indices = @transform_5, window_bounds = array<i64: 16, 96>}]} {
    %c0 = arith.constant 0 : index
    %c0_0 = arith.constant 0 : index
    %0 = vector.load %arg5[%c0, %c0_0] : memref<16x128xf32, #tpu.memory_space<vmem>>, vector<16x128xf32>
    %c0_1 = arith.constant 0 : index
    %c0_2 = arith.constant 0 : index
    %1 = vector.load %arg1[%c0_1, %c0_2] : memref<128x512xf32, #tpu.memory_space<vmem>>, vector<128x512xf32>
    %c0_3 = arith.constant 0 : index
    %c0_4 = arith.constant 0 : index
    %2 = vector.load %arg3[%c0_3, %c0_4] : memref<512x96xf32, #tpu.memory_space<vmem>>, vector<512x96xf32>
    %cst = arith.constant dense<0.000000e+00> : vector<16x512xf32>
    %3 = tpu.matmul %0, %1, %cst {dimension_numbers = #tpu.dot_dimension_numbers<[1], [0], [0], [1], [0, 0, 1, 1], [], []>} : vector<16x128xf32>, vector<128x512xf32>, vector<16x512xf32> -> vector<16x512xf32>
    %c0_5 = arith.constant 0 : index
    %c0_6 = arith.constant 0 : index
    %4 = vector.load %arg2[%c0_5, %c0_6] : memref<1x512xf32, #tpu.memory_space<vmem>>, vector<1x512xf32>
    %5 = vector.broadcast %4 : vector<1x512xf32> to vector<16x512xf32>
    %6 = arith.addf %3, %5 : vector<16x512xf32>
    %cst_7 = arith.constant 0.000000e+00 : f32
    %7 = vector.broadcast %cst_7 : f32 to vector<16x512xf32>
    %8 = arith.maximumf %6, %7 : vector<16x512xf32>
    %cst_8 = arith.constant dense<0.000000e+00> : vector<16x96xf32>
    %9 = tpu.matmul %8, %2, %cst_8 {dimension_numbers = #tpu.dot_dimension_numbers<[1], [0], [0], [1], [0, 0, 1, 1], [], []>} : vector<16x512xf32>, vector<512x96xf32>, vector<16x96xf32> -> vector<16x96xf32>
    %c0_9 = arith.constant 0 : index
    %c0_10 = arith.constant 0 : index
    %10 = vector.load %arg4[%c0_9, %c0_10] : memref<1x96xf32, #tpu.memory_space<vmem>>, vector<1x96xf32>
    %11 = vector.broadcast %10 : vector<1x96xf32> to vector<16x96xf32>
    %12 = arith.addf %9, %11 : vector<16x96xf32>
    %c0_11 = arith.constant 0 : index
    %c0_12 = arith.constant 0 : index
    %13 = vector.load %arg6[%c0_11, %c0_12] : memref<16x96xf32, #tpu.memory_space<vmem>>, vector<16x96xf32>
    tpu.vector_store %arg6[%c0_11, %c0_12], %12 {strides = array<i32>} : memref<16x96xf32, #tpu.memory_space<vmem>>, vector<16x96xf32>,
    return
  }
  func.func @transform_0(%arg0: i32) -> (i32, i32) {
    %c0_i32 = arith.constant 0 : i32
    %c0_i32_0 = arith.constant 0 : i32
    %c0_i32_1 = arith.constant 0 : i32
    return %c0_i32, %c0_i32_0 : i32, i32
  }
  func.func @transform_1(%arg0: i32) -> (i32, i32) {
    %c0_i32 = arith.constant 0 : i32
    %c0_i32_0 = arith.constant 0 : i32
    %c0_i32_1 = arith.constant 0 : i32
    return %c0_i32, %c0_i32_0 : i32, i32
  }
  func.func @transform_2(%arg0: i32) -> (i32, i32) {
    %c0_i32 = arith.constant 0 : i32
    %c0_i32_0 = arith.constant 0 : i32
    %c0_i32_1 = arith.constant 0 : i32
    return %c0_i32, %c0_i32_0 : i32, i32
  }
  func.func @transform_3(%arg0: i32) -> (i32, i32) {
    %c0_i32 = arith.constant 0 : i32
    %c0_i32_0 = arith.constant 0 : i32
    %c0_i32_1 = arith.constant 0 : i32
    return %c0_i32, %c0_i32_0 : i32, i32
  }
  func.func @transform_4(%arg0: i32) -> (i32, i32) {
    %c0_i32 = arith.constant 0 : i32
    %c0_i32_0 = arith.constant 0 : i32
    return %arg0, %c0_i32 : i32, i32
  }
  func.func @transform_5(%arg0: i32) -> (i32, i32) {
    %c0_i32 = arith.constant 0 : i32
    %c0_i32_0 = arith.constant 0 : i32
    return %arg0, %c0_i32 : i32, i32
  }
}

</mosaic_0001>

<bundles_post_ra>
// kernel: tpu_custom_call.1
= control target key start
LH: loop header
LB: loop body
LE: loop exit
PB: predicated region body
PF: predicated region fallthrough
CT: control target
= control target key end

     0   :  { %s1047_s0 = inlined_call_operand.vmem [shape: f32[128,512], index: 0, kind: input, shape index: {}]   ;;  %s1048_s1 = inlined_call_operand.vmem [shape: f32[1,512], index: 1, kind: input, shape index: {}]   ;;  %s1049_s2 = inlined_call_operand.vmem [shape: f32[512,96], index: 2, kind: input, shape index: {}]   ;;  %s1050_s3 = inlined_call_operand.vmem [shape: f32[1,96], index: 3, kind: input, shape index: {}]   ;;  %s1051_s4 = inlined_call_operand.vmem [shape: f32[16,128], index: 4, kind: input, shape index: {}]   ;;  %s1052_s5 = inlined_call_operand.hbm [shape: f32[16,96], index: 5, kind: output, shape index: {}]  }
   0x1   :  { %v84_v0 = vld [vmem:[%s1047_s0 + $0x1e8] sm:$0xff]  ;;  %v86_v1 = vld [vmem:[%s1047_s0 + $0x1f8] sm:$0xff]  ;;  %v83_v2 = vld [vmem:[%s1047_s0 + $0x1e0] sm:$0xff] }
   0x2   :  { %173 = vmatprep.subr.mxu0 %v84_v0  ;;  %250 = vmatprep.subr.mxu1 %v86_v1  ;;  %v85_v3 = vld [vmem:[%s1047_s0 + $0x1f0] sm:$0xff]  ;;  %v80_v4 = vld [vmem:[%s1047_s0 + $0x1c8] sm:$0xff]  ;;  %v82_v5 = vld [vmem:[%s1047_s0 + $0x1d8] sm:$0xff]  ;;  %v614_v1 = vmov 0.0  }
   0x3   :  { %174 = vmatpush1.msra.mxu0 %v83_v2  ;;  %251 = vmatpush1.msra.mxu1 %v85_v3  ;;  %v79_v6 = vld [vmem:[%s1047_s0 + $0x1c0] sm:$0xff]  ;;  %v81_v7 = vld [vmem:[%s1047_s0 + $0x1d0] sm:$0xff]  ;;  %v76_v8 = vld [vmem:[%s1047_s0 + $0x1a8] sm:$0xff] }
   0x4   :  { %175 = vmatprep.subr.mxu0 %v80_v4  ;;  %252 = vmatprep.subr.mxu1 %v82_v5  ;;  %v78_v9 = vld [vmem:[%s1047_s0 + $0x1b8] sm:$0xff]  ;;  %v75_v10 = vld [vmem:[%s1047_s0 + $0x1a0] sm:$0xff]  ;;  %v77_v11 = vld [vmem:[%s1047_s0 + $0x1b0] sm:$0xff] }
   0x5   :  { %176 = vmatpush1.msra.mxu0 %v79_v6  ;;  %253 = vmatpush1.msra.mxu1 %v81_v7  ;;  %v72_v12 = vld [vmem:[%s1047_s0 + $0x188] sm:$0xff]  ;;  %v74_v13 = vld [vmem:[%s1047_s0 + $0x198] sm:$0xff]  ;;  %v71_v14 = vld [vmem:[%s1047_s0 + $0x180] sm:$0xff] }
   0x6   :  { %177 = vmatprep.subr.mxu0 %v76_v8  ;;  %254 = vmatprep.subr.mxu1 %v78_v9  ;;  %v73_v15 = vld [vmem:[%s1047_s0 + $0x190] sm:$0xff]  ;;  %v68_v16 = vld [vmem:[%s1047_s0 + $0x168] sm:$0xff]  ;;  %v70_v17 = vld [vmem:[%s1047_s0 + $0x178] sm:$0xff] }
   0x7   :  { %178 = vmatpush1.msra.mxu0 %v75_v10  ;;  %255 = vmatpush1.msra.mxu1 %v77_v11  ;;  %v67_v18 = vld [vmem:[%s1047_s0 + $0x160] sm:$0xff]  ;;  %v69_v19 = vld [vmem:[%s1047_s0 + $0x170] sm:$0xff]  ;;  %v64_v20 = vld [vmem:[%s1047_s0 + $0x148] sm:$0xff] }
   0x8   :  { %179 = vmatprep.subr.mxu0 %v72_v12  ;;  %256 = vmatprep.subr.mxu1 %v74_v13  ;;  %v66_v21 = vld [vmem:[%s1047_s0 + $0x158] sm:$0xff]  ;;  %v63_v22 = vld [vmem:[%s1047_s0 + $0x140] sm:$0xff]  ;;  %v65_v23 = vld [vmem:[%s1047_s0 + $0x150] sm:$0xff] }
   0x9   :  { %180 = vmatpush1.msra.mxu0 %v71_v14  ;;  %257 = vmatpush1.msra.mxu1 %v73_v15  ;;  %v60_v24 = vld [vmem:[%s1047_s0 + $0x128] sm:$0xff]  ;;  %v62_v25 = vld [vmem:[%s1047_s0 + $0x138] sm:$0xff]  ;;  %v59_v26 = vld [vmem:[%s1047_s0 + $0x120] sm:$0xff] }
   0xa   :  { %181 = vmatprep.subr.mxu0 %v68_v16  ;;  %258 = vmatprep.subr.mxu1 %v70_v17  ;;  %v61_v27 = vld [vmem:[%s1047_s0 + $0x130] sm:$0xff]  ;;  %v56_v28 = vld [vmem:[%s1047_s0 + $0x108] sm:$0xff]  ;;  %v58_v29 = vld [vmem:[%s1047_s0 + $0x118] sm:$0xff] }
   0xb   :  { %182 = vmatpush1.msra.mxu0 %v67_v18  ;;  %259 = vmatpush1.msra.mxu1 %v69_v19  ;;  %v55_v30 = vld [vmem:[%s1047_s0 + $0x100] sm:$0xff]  ;;  %v57_v31 = vld [vmem:[%s1047_s0 + $0x110] sm:$0xff]  ;;  %v52_v32 = vld [vmem:[%s1047_s0 + $0xe8] sm:$0xff] }
   0xc   :  { %183 = vmatprep.subr.mxu0 %v64_v20  ;;  %260 = vmatprep.subr.mxu1 %v66_v21  ;;  %v54_v33 = vld [vmem:[%s1047_s0 + $0xf8] sm:$0xff]  ;;  %v51_v34 = vld [vmem:[%s1047_s0 + $0xe0] sm:$0xff]  ;;  %v53_v35 = vld [vmem:[%s1047_s0 + $0xf0] sm:$0xff] }
   0xd   :  { %184 = vmatpush1.msra.mxu0 %v63_v22  ;;  %261 = vmatpush1.msra.mxu1 %v65_v23  ;;  %v48_v36 = vld [vmem:[%s1047_s0 + $0xc8] sm:$0xff]  ;;  %v50_v37 = vld [vmem:[%s1047_s0 + $0xd8] sm:$0xff]  ;;  %v47_v38 = vld [vmem:[%s1047_s0 + $0xc0] sm:$0xff] }
   0xe   :  { %185 = vmatprep.subr.mxu0 %v60_v24  ;;  %262 = vmatprep.subr.mxu1 %v62_v25  ;;  %v49_v39 = vld [vmem:[%s1047_s0 + $0xd0] sm:$0xff]  ;;  %v44_v40 = vld [vmem:[%s1047_s0 + $0xa8] sm:$0xff]  ;;  %v46_v41 = vld [vmem:[%s1047_s0 + $0xb8] sm:$0xff] }
   0xf   :  { %186 = vmatpush1.msra.mxu0 %v59_v26  ;;  %263 = vmatpush1.msra.mxu1 %v61_v27  ;;  %v43_v42 = vld [vmem:[%s1047_s0 + $0xa0] sm:$0xff]  ;;  %v45_v43 = vld [vmem:[%s1047_s0 + $0xb0] sm:$0xff]  ;;  %v40_v44 = vld [vmem:[%s1047_s0 + $0x88] sm:$0xff] }
  0x10   :  { %187 = vmatprep.subr.mxu0 %v56_v28  ;;  %264 = vmatprep.subr.mxu1 %v58_v29  ;;  %v42_v45 = vld [vmem:[%s1047_s0 + $0x98] sm:$0xff]  ;;  %v39_v46 = vld [vmem:[%s1047_s0 + $0x80] sm:$0xff]  ;;  %v41_v47 = vld [vmem:[%s1047_s0 + $0x90] sm:$0xff] }
  0x11   :  { %188 = vmatpush1.msra.mxu0 %v55_v30  ;;  %265 = vmatpush1.msra.mxu1 %v57_v31  ;;  %v36_v48 = vld [vmem:[%s1047_s0 + $0x68] sm:$0xff]  ;;  %v38_v49 = vld [vmem:[%s1047_s0 + $0x78] sm:$0xff]  ;;  %v35_v50 = vld [vmem:[%s1047_s0 + $0x60] sm:$0xff] }
  0x12   :  { %189 = vmatprep.subr.mxu0 %v52_v32  ;;  %266 = vmatprep.subr.mxu1 %v54_v33  ;;  %v37_v51 = vld [vmem:[%s1047_s0 + $0x70] sm:$0xff]  ;;  %v32_v52 = vld [vmem:[%s1047_s0 + $0x48] sm:$0xff]  ;;  %v34_v53 = vld [vmem:[%s1047_s0 + $0x58] sm:$0xff] }
  0x13   :  { %190 = vmatpush1.msra.mxu0 %v51_v34  ;;  %267 = vmatpush1.msra.mxu1 %v53_v35  ;;  %v31_v54 = vld [vmem:[%s1047_s0 + $0x40] sm:$0xff]  ;;  %v33_v55 = vld [vmem:[%s1047_s0 + $0x50] sm:$0xff]  ;;  %v28_v56 = vld [vmem:[%s1047_s0 + $0x28] sm:$0xff] }
  0x14   :  { %191 = vmatprep.subr.mxu0 %v48_v36  ;;  %268 = vmatprep.subr.mxu1 %v50_v37  ;;  %v30_v57 = vld [vmem:[%s1047_s0 + $0x38] sm:$0xff]  ;;  %v27_v58 = vld [vmem:[%s1047_s0 + $0x20] sm:$0xff]  ;;  %v29_v59 = vld [vmem:[%s1047_s0 + $0x30] sm:$0xff] }
  0x15   :  { %192 = vmatpush1.msra.mxu0 %v47_v38  ;;  %269 = vmatpush1.msra.mxu1 %v49_v39  ;;  %v24_v60 = vld [vmem:[%s1047_s0 + $0x8] sm:$0xff]  ;;  %v26_v61 = vld [vmem:[%s1047_s0 + $0x18] sm:$0xff]  ;;  %v23_v62 = vld [vmem:[%s1047_s0] sm:$0xff] }
  0x16   :  { %193 = vmatprep.subr.mxu0 %v44_v40  ;;  %270 = vmatprep.subr.mxu1 %v46_v41  ;;  %v25_v63 = vld [vmem:[%s1047_s0 + $0x10] sm:$0xff]  ;;  %v21_v0 = vld [vmem:[%s1051_s4] sm:$0xff]  ;;  %v118_v2 = vld [vmem:[%s1049_s2 + $0xf8] sm:$0xff] }
  0x17   :  { %194 = vmatpush1.msra.mxu0 %v43_v42  ;;  %271 = vmatpush1.msra.mxu1 %v45_v43  ;;  %v150_v3 = vld [vmem:[%s1049_s2 + $0x1f8] sm:$0xff]  ;;  %v22_v6 = vld [vmem:[%s1051_s4 + $0x8] sm:$0xff]  ;;  %v117_v7 = vld [vmem:[%s1049_s2 + $0xf0] sm:$0xff] }
  0x18   :  { %195 = vmatprep.subr.mxu0 %v40_v44  ;;  %272 = vmatprep.subr.mxu1 %v42_v45  ;;  %v102_v4 = vld [vmem:[%s1049_s2 + $0x78] sm:$0xff]  ;;  %v149_v8 = vld [vmem:[%s1049_s2 + $0x1f0] sm:$0xff]  ;;  %v116_v11 = vld [vmem:[%s1049_s2 + $0xe8] sm:$0xff] }
  0x19   :  { %196 = vmatpush1.msra.mxu0 %v39_v46  ;;  %273 = vmatpush1.msra.mxu1 %v41_v47  ;;  %v134_v5 = vld [vmem:[%s1049_s2 + $0x178] sm:$0xff]  ;;  %v101_v9 = vld [vmem:[%s1049_s2 + $0x70] sm:$0xff]  ;;  %v148_v12 = vld [vmem:[%s1049_s2 + $0x1e8] sm:$0xff] }
  0x1a   :  { %197 = vmatprep.subr.mxu0 %v36_v48  ;;  %274 = vmatprep.subr.mxu1 %v38_v49  ;;  %v133_v10 = vld [vmem:[%s1049_s2 + $0x170] sm:$0xff] }
  0x1b   :  { %198 = vmatpush1.msra.mxu0 %v35_v50  ;;  %275 = vmatpush1.msra.mxu1 %v37_v51 }
  0x1c   :  { %199 = vmatprep.subr.mxu0 %v32_v52  ;;  %276 = vmatprep.subr.mxu1 %v34_v53 }
  0x1d   :  { %200 = vmatpush1.msra.mxu0 %v31_v54  ;;  %277 = vmatpush1.msra.mxu1 %v33_v55 }
  0x1e   :  { %201 = vmatprep.subr.mxu0 %v28_v56  ;;  %278 = vmatprep.subr.mxu1 %v30_v57 }
  0x1f   :  { %202 = vmatpush1.msra.mxu0 %v27_v58  ;;  %279 = vmatpush1.msra.mxu1 %v29_v59 }
  0x20   :  { %203 = vmatprep.subr.mxu0 %v24_v60  ;;  %280 = vmatprep.subr.mxu1 %v26_v61 }
  0x21   :  { %204 = vmatpush1.msra.mxu0 %v23_v62  ;;  %237 = vmatprep.mubr.f32.mxu0 %v614_v1 }
  0x22   :  { %281 = vmatpush1.msra.mxu1 %v25_v63  ;;  %314 = vmatprep.mubr.f32.mxu1 %v614_v1 }
  0x23   :  { %238 = vmatmul.mubr.f32.vlgmr.msra.gmra.mxu0 %v21_v0  ;;  %315 = vmatmul.mubr.f32.vlgmr.msra.gmra.mxu1 %v21_v0 }
  0x24   :  { %243 = vmatprep.mubr.f32.mxu0 %v614_v1  ;;  %320 = vmatprep.mubr.f32.mxu1 %v614_v1 }
  0x25   :  { %512 = vmatprep.subr.mxu0 %v118_v2  ;;  %550 = vmatprep.subr.mxu1 %v150_v3 }
  0x26   :  { %513 = vmatpush3.msra.mxu0 %v102_v4  ;;  %551 = vmatpush3.msra.mxu1 %v134_v5 }
  0x27   :  { %244 = vmatmul.mubr.f32.gmra.mxu0 %v22_v6  ;;  %321 = vmatmul.mubr.f32.gmra.mxu1 %v22_v6 }
  0x28   :  { %10 = vsyncpa [#allocation3], 0  ;;  %514 = vmatprep.subr.mxu0 %v117_v7  ;;  %552 = vmatprep.subr.mxu1 %v149_v8  ;;  %v100_v13 = vld [vmem:[%s1049_s2 + $0x68] sm:$0xff]  ;;  %v115_v15 = vld [vmem:[%s1049_s2 + $0xe0] sm:$0xff]  ;;  %v153_v3 = vlaneseq  ;;  %vm492_vm0 = vcmask 785408   ;;  %s615_s20 = smov [#allocation2]  }
  0x29   :  { %v132_v14 = vld [vmem:[%s1049_s2 + $0x168] sm:$0xff]  ;;  %515 = vmatpush3.msra.mxu0 %v101_v9  ;;  %553 = vmatpush3.msra.mxu1 %v133_v10  ;;  %v147_v16 = vld [vmem:[%s1049_s2 + $0x1e0] sm:$0xff]  ;;  %v114_v19 = vld [vmem:[%s1049_s2 + $0xd8] sm:$0xff]  ;;  %s500_s21 = sshll.u32 %s615_s20, 4  ;;  %s501_s21 = int_to_ptr.vmem [resolvable:$true] %s500_s21 }
  0x2a   :  { %516 = vmatprep.subr.mxu0 %v116_v11  ;;  %554 = vmatprep.subr.mxu1 %v148_v12  ;;  %v99_v17 = vld [vmem:[%s1049_s2 + $0x60] sm:$0xff]  ;;  %v146_v20 = vld [vmem:[%s1049_s2 + $0x1d8] sm:$0xff]  ;;  %v113_v23 = vld [vmem:[%s1049_s2 + $0xd0] sm:$0xff]  ;;  %v154_v4 = vshrl.u32 %v153_v3, 7  ;;  %p597_p1 = scmp.lt.s32.totalorder %s501_s21, %s501_s21 }
  0x2b   :  { %v131_v18 = vld [vmem:[%s1049_s2 + $0x160] sm:$0xff]  ;;  %517 = vmatpush3.msra.mxu0 %v100_v13  ;;  %555 = vmatpush3.msra.mxu1 %v132_v14  ;;  %v98_v21 = vld [vmem:[%s1049_s2 + $0x58] sm:$0xff]  ;;  %v145_v24 = vld [vmem:[%s1049_s2 + $0x1d0] sm:$0xff] }
  0x2c   :  { %518 = vmatprep.subr.mxu0 %v115_v15  ;;  %556 = vmatprep.subr.mxu1 %v147_v16  ;;  %v130_v22 = vld [vmem:[%s1049_s2 + $0x158] sm:$0xff]  ;;  %v97_v25 = vld [vmem:[%s1049_s2 + $0x50] sm:$0xff]  ;;  %v112_v27 = vld [vmem:[%s1049_s2 + $0xc8] sm:$0xff]  ;;  %v163_v5 = vsub.s32 2, %v154_v4  ;;  %v155_v6 = vsub.s32 0, %v154_v4  ;;  %v159_v8 = vsub.s32 1, %v154_v4 }
  0x2d   :  { %519 = vmatpush3.msra.mxu0 %v99_v17  ;;  %557 = vmatpush3.msra.mxu1 %v131_v18  ;;  %v129_v26 = vld [vmem:[%s1049_s2 + $0x150] sm:$0xff]  ;;  %v144_v28 = vld [vmem:[%s1049_s2 + $0x1c8] sm:$0xff]  ;;  %v111_v31 = vld [vmem:[%s1049_s2 + $0xc0] sm:$0xff]  ;;  %v167_v9 = vsub.s32 3, %v154_v4 }
  0x2e   :  { %520 = vmatprep.subr.mxu0 %v114_v19  ;;  %558 = vmatprep.subr.mxu1 %v146_v20  ;;  %v96_v29 = vld [vmem:[%s1049_s2 + $0x48] sm:$0xff]  ;;  %v143_v32 = vld [vmem:[%s1049_s2 + $0x1c0] sm:$0xff]  ;;  %v110_v35 = vld [vmem:[%s1049_s2 + $0xb8] sm:$0xff] }
  0x2f   :  { %521 = vmatpush3.msra.mxu0 %v98_v21  ;;  %559 = vmatpush3.msra.mxu1 %v130_v22  ;;  %v128_v30 = vld [vmem:[%s1049_s2 + $0x148] sm:$0xff]  ;;  %v95_v33 = vld [vmem:[%s1049_s2 + $0x40] sm:$0xff]  ;;  %v142_v36 = vld [vmem:[%s1049_s2 + $0x1b8] sm:$0xff] }
  0x30   :  { %522 = vmatprep.subr.mxu0 %v113_v23  ;;  %560 = vmatprep.subr.mxu1 %v145_v24  ;;  %v127_v34 = vld [vmem:[%s1049_s2 + $0x140] sm:$0xff]  ;;  %v94_v37 = vld [vmem:[%s1049_s2 + $0x38] sm:$0xff]  ;;  %v109_v39 = vld [vmem:[%s1049_s2 + $0xb0] sm:$0xff] }
  0x31   :  { %523 = vmatpush3.msra.mxu0 %v97_v25  ;;  %561 = vmatpush3.msra.mxu1 %v129_v26  ;;  %v126_v38 = vld [vmem:[%s1049_s2 + $0x138] sm:$0xff]  ;;  %v141_v40 = vld [vmem:[%s1049_s2 + $0x1b0] sm:$0xff]  ;;  %v108_v43 = vld [vmem:[%s1049_s2 + $0xa8] sm:$0xff] }
  0x32   :  { %524 = vmatprep.subr.mxu0 %v112_v27  ;;  %562 = vmatprep.subr.mxu1 %v144_v28  ;;  %v93_v41 = vld [vmem:[%s1049_s2 + $0x30] sm:$0xff]  ;;  %v140_v44 = vld [vmem:[%s1049_s2 + $0x1a8] sm:$0xff]  ;;  %v107_v47 = vld [vmem:[%s1049_s2 + $0xa0] sm:$0xff] }
  0x33   :  { %525 = vmatpush3.msra.mxu0 %v96_v29  ;;  %563 = vmatpush3.msra.mxu1 %v128_v30  ;;  %v125_v42 = vld [vmem:[%s1049_s2 + $0x130] sm:$0xff]  ;;  %v92_v45 = vld [vmem:[%s1049_s2 + $0x28] sm:$0xff]  ;;  %v139_v48 = vld [vmem:[%s1049_s2 + $0x1a0] sm:$0xff] }
  0x34   :  { %526 = vmatprep.subr.mxu0 %v111_v31  ;;  %564 = vmatprep.subr.mxu1 %v143_v32  ;;  %v124_v46 = vld [vmem:[%s1049_s2 + $0x128] sm:$0xff]  ;;  %v91_v49 = vld [vmem:[%s1049_s2 + $0x20] sm:$0xff]  ;;  %v106_v51 = vld [vmem:[%s1049_s2 + $0x98] sm:$0xff] }
  0x35   :  { %527 = vmatpush3.msra.mxu0 %v95_v33  ;;  %565 = vmatpush3.msra.mxu1 %v127_v34  ;;  %v123_v50 = vld [vmem:[%s1049_s2 + $0x120] sm:$0xff]  ;;  %v138_v52 = vld [vmem:[%s1049_s2 + $0x198] sm:$0xff]  ;;  %v105_v55 = vld [vmem:[%s1049_s2 + $0x90] sm:$0xff] }
  0x36   :  { %528 = vmatprep.subr.mxu0 %v110_v35  ;;  %566 = vmatprep.subr.mxu1 %v142_v36  ;;  %v90_v53 = vld [vmem:[%s1049_s2 + $0x18] sm:$0xff]  ;;  %v137_v56 = vld [vmem:[%s1049_s2 + $0x190] sm:$0xff]  ;;  %v104_v59 = vld [vmem:[%s1049_s2 + $0x88] sm:$0xff] }
  0x37   :  { %529 = vmatpush3.msra.mxu0 %v94_v37  ;;  %567 = vmatpush3.msra.mxu1 %v126_v38  ;;  %v122_v54 = vld [vmem:[%s1049_s2 + $0x118] sm:$0xff]  ;;  %v89_v57 = vld [vmem:[%s1049_s2 + $0x10] sm:$0xff]  ;;  %v136_v60 = vld [vmem:[%s1049_s2 + $0x188] sm:$0xff] }
  0x38   :  { %530 = vmatprep.subr.mxu0 %v109_v39  ;;  %568 = vmatprep.subr.mxu1 %v141_v40  ;;  %v121_v58 = vld [vmem:[%s1049_s2 + $0x110] sm:$0xff]  ;;  %v88_v61 = vld [vmem:[%s1049_s2 + $0x8] sm:$0xff]  ;;  %v103_v63 = vld [vmem:[%s1049_s2 + $0x80] sm:$0xff] }
  0x39   :  { %531 = vmatpush3.msra.mxu0 %v93_v41  ;;  %569 = vmatpush3.msra.mxu1 %v125_v42  ;;  %v120_v62 = vld [vmem:[%s1049_s2 + $0x108] sm:$0xff]  ;;  %v135_v0 = vld [vmem:[%s1049_s2 + $0x180] sm:$0xff] }
  0x3a   :  { %532 = vmatprep.subr.mxu0 %v108_v43  ;;  %570 = vmatprep.subr.mxu1 %v140_v44  ;;  %v87_v1 = vld [vmem:[%s1049_s2] sm:$0xff] }
  0x3b   :  { %533 = vmatpush3.msra.mxu0 %v92_v45  ;;  %571 = vmatpush3.msra.mxu1 %v124_v46  ;;  %v119_v2 = vld [vmem:[%s1049_s2 + $0x100] sm:$0xff] }
  0x3c   :  { %534 = vmatprep.subr.mxu0 %v107_v47  ;;  %572 = vmatprep.subr.mxu1 %v139_v48  ;;  %v151_v7 = vld [vmem:[%s1048_s1] sm:$0xf] }
  0x3d   :  { %535 = vmatpush3.msra.mxu0 %v91_v49  ;;  %573 = vmatpush3.msra.mxu1 %v123_v50  ;;  %v164_v10 = vrot.slane %v151_v7, %v163_v5  ;;  %v156_v11 = vrot.slane %v151_v7, %v155_v6  ;;  %v160_v12 = vrot.slane %v151_v7, %v159_v8  ;;  %v511_v40 = vld [vmem:[%s1050_s3] ss:$0 sm:$0xff]  ;;  %s592_s3 = scalar_lea.vmem %s501_s21, 256 }
  0x3e   :  { %536 = vmatprep.subr.mxu0 %v106_v51  ;;  %574 = vmatprep.subr.mxu1 %v138_v52  ;;  %v168_v13 = vrot.slane %v151_v7, %v167_v9  ;;  %p593_p0 = scmp.ne.s32.totalorder %s501_s21, %s592_s3  ;;  %p598_p2 = scmp.lt.s32.totalorder %s592_s3, %s592_s3 }
  0x3f   :  { %537 = vmatpush3.msra.mxu0 %v90_v53  ;;  %575 = vmatpush3.msra.mxu1 %v122_v54 }
  0x40   :  { %538 = vmatprep.subr.mxu0 %v105_v55  ;;  %576 = vmatprep.subr.mxu1 %v137_v56  ;;  %p599_p3 = por %p598_p2, %p597_p1 }
  0x41   :  { %539 = vmatpush3.msra.mxu0 %v89_v57  ;;  %577 = vmatpush3.msra.mxu1 %v121_v58 }
  0x42   :  { %540 = vmatprep.subr.mxu0 %v104_v59  ;;  %578 = vmatprep.subr.mxu1 %v136_v60  ;;  %p600_p4 = pnand %p599_p3, %p593_p0 }
  0x43   :  { %541 = vmatpush3.msra.mxu0 %v88_v61  ;;  %579 = vmatpush3.msra.mxu1 %v120_v62 }
  0x44   :  { %542 = vmatprep.subr.mxu0 %v103_v63  ;;  %580 = vmatprep.subr.mxu1 %v135_v0 }
  0x45   :  { %543 = vmatpush3.msra.mxu0 %v87_v1  ;;  %581 = vmatpush3.msra.mxu1 %v119_v2 }
  0xe3   :  { %v239_v14 = vpop.f32.mrf.mxu0  ;;  %v316_v15 = vpop.f32.mrf.mxu1 }
  0xe4   :  { %v317_v16 = vadd.f32 %v316_v15, %v164_v10  ;;  %v240_v17 = vadd.f32 %v239_v14, %v156_v11 }
  0xe5   :  { %v241_v18 = vpop.f32.mrf.mxu0  ;;  %v318_v19 = vpop.f32.mrf.mxu1 }
  0xe6   :  { %v242_v20 = vadd.f32 %v241_v18, %v160_v12  ;;  %v319_v21 = vadd.f32 %v318_v19, %v168_v13  ;;  %v329_v22 = vmax.f32 %v317_v16, 0.0  ;;  %v327_v28 = vmax.f32 %v240_v17, 0.0 }
  0xe7   :  { %v245_v23 = vpop.f32.mrf.mxu0  ;;  %v322_v24 = vpop.f32.mrf.mxu1 }
  0xe8   :  { %v328_v25 = vmax.f32 %v242_v20, 0.0  ;;  %v330_v26 = vmax.f32 %v319_v21, 0.0  ;;  %v323_v27 = vadd.f32 %v322_v24, %v164_v10  ;;  %v246_v29 = vadd.f32 %v245_v23, %v156_v11 }
  0xe9   :  { %v247_v30 = vpop.f32.mrf.mxu0  ;;  %v324_v31 = vpop.f32.mrf.mxu1 }
  0xea   :  { %v248_v32 = vadd.f32 %v247_v30, %v160_v12  ;;  %v325_v33 = vadd.f32 %v324_v31, %v168_v13  ;;  %406 = vmatprep.mubr.f32.mxu0 %v328_v25  ;;  %481 = vmatprep.mubr.f32.mxu1 %v330_v26  ;;  %v333_v34 = vmax.f32 %v323_v27, 0.0  ;;  %v331_v37 = vmax.f32 %v246_v29, 0.0 }
  0xeb   :  { %407 = vmatmul.mubr.f32.vlgmr.msra.gmra.mxu0 %v327_v28  ;;  %482 = vmatmul.mubr.f32.vlgmr.msra.gmra.mxu1 %v329_v22 }
  0xec   :  { %v332_v35 = vmax.f32 %v248_v32, 0.0  ;;  %v334_v36 = vmax.f32 %v325_v33, 0.0 }
  0xee   :  { %411 = vmatprep.mubr.f32.mxu0 %v332_v35  ;;  %486 = vmatprep.mubr.f32.mxu1 %v334_v36 }
  0xef   :  { %412 = vmatmul.mubr.f32.gmra.mxu0 %v331_v37  ;;  %487 = vmatmul.mubr.f32.gmra.mxu1 %v333_v34 }
 0x1ab   :  { %v544_v38 = vpop.f32.mrf.mxu0  ;;  %v582_v39 = vpop.f32.mrf.mxu1 }
 0x1ad   :  { %v545_v41 = vpop.f32.mrf.mxu0  ;;  %v583_v42 = vpop.f32.mrf.mxu1 }
 0x1ae   :  { %v546_v43 = vadd.f32 %v545_v41, %v544_v38  ;;  %v584_v47 = vadd.f32 %v583_v42, %v582_v39 }
 0x1af   :  { %v547_v44 = vpop.f32.mrf.mxu0  ;;  %v585_v45 = vpop.f32.mrf.mxu1 }
 0x1b0   :  { %v409_v46 = vadd.f32 %v546_v43, %v511_v40 }
 0x1b1   :  { %v548_v48 = vpop.f32.mrf.mxu0  ;;  %v586_v49 = vpop.f32.mrf.mxu1 }
 0x1b2   :  { %v484_v50 = vadd.f32 %v584_v47, %v409_v46  ;;  %v549_v51 = vadd.f32 %v548_v48, %v547_v44  ;;  %v587_v53 = vadd.f32 %v586_v49, %v585_v45 }
 0x1b4   :  { %493 = vst.msk [vmem:[#allocation2] sm:$0xff] %vm492_vm0, %v484_v50  ;;  %v414_v52 = vadd.f32 %v549_v51, %v511_v40 }
 0x1b6   :  { %v489_v54 = vadd.f32 %v587_v53, %v414_v52 }
 0x1b8   :  { %494 = vst.msk [vmem:[#allocation2 + $0x8] sm:$0xff] %vm492_vm0, %v489_v54 }
 0x1b9   :  { %603 = shalt.err (!%p600_p4)
}
 0x1ba   :  { %s616_s22 = smov 128   ;;  %s617_s23 = smov 8  }
 0x1bb   :  { %506 = dma.vmem_to_hbm [thread:$0]  %s501_s21, 256, %s1052_s5, [#allocation3], %s616_s22, %s616_s22, %s617_s23  }
 0x1bc   :  { %612 = dma.done.wait [#allocation3], 256  }
 0x1bd   :  { %613 = vsyncadd [#allocation3], 4294967040 }
 0x1be   :  { %510 = vsyncpa [#allocation3], 1 }

</bundles_post_ra>
